<compile_context>
chip_gen: v7x
topology: tpu7x:2x2x1
jax: 0.10.0
libtpu: 0.0.40
codegen_flags: <defaults>
</compile_context>

<pallas_src>
import jax
import jax.numpy as jnp
from jax.experimental import pallas as pl
from jax.experimental.pallas import tpu as pltpu


def _tpu_vmem_capacity_bytes():
    try:
        cap = getattr(pltpu.get_tpu_info(), "vmem_capacity_bytes", None)
        if cap:
            return int(cap)
    except Exception:
        pass
    return 64 * 1024 * 1024              # conservative fallback (v7x-sized VMEM)


_VMEM_CAP = _tpu_vmem_capacity_bytes()                       # 128 MiB v5e/v6e, 64 MiB v7x
_VMEM_LIMIT = min((_VMEM_CAP * 3) // 4, 96 * 1024 * 1024)    # scoped-VMEM budget we request
_MAX_TILE_BYTES = (4 if _VMEM_CAP <= 64 * 1024 * 1024 else 8) * 1024 * 1024
_FUSED_MAX_X_BYTES = _VMEM_LIMIT // 4    # x + centered temp + output + headroom


def _pick_tiles(rows, hw, max_tile_bytes):
    """(row_tile, lane_tile) for the streamed sweeps over x viewed as (rows, hw).

    Row tile: multiple of 8 dividing `rows` (or rows itself). Lane tile: multiple
    of 128 dividing `hw` (or hw itself). The x tile stays under max_tile_bytes
    whenever the divisibility constraints allow it.
    """
    if hw % 128 == 0:
        lane_cap = max(128, (max_tile_bytes // (4 * 8) // 128) * 128)
        t = (min(hw, lane_cap) // 128) * 128
        while t >= 128 and hw % t != 0:
            t -= 128
        thw = t if t >= 128 else hw
    else:
        thw = hw
    if rows % 8 == 0:
        max_rows = max(8, (max_tile_bytes // (4 * thw) // 8) * 8)
        t = (min(rows, max_rows) // 8) * 8
        while t >= 8 and rows % t != 0:
            t -= 8
        tr = t if t >= 8 else rows
    else:
        tr = rows            # full-rows block ((8,128) rule: full dim is always legal)
    return tr, thw


def _pick_fold(thw):
    """Lane width of the stats accumulator: a multiple of 128 dividing thw with at
    most 8 unrolled chunk-adds per grid step (thw itself if hw is ragged)."""
    if thw % 128 != 0:
        return thw
    q = thw // 128
    d = (q + 7) // 8
    while q % d != 0:
        d += 1
    return 128 * d


# --------------------------- fused single-pass path ---------------------------

def _bn_fused_kernel(x_ref, gamma_ref, beta_ref, eps_ref, o_ref, stats_ref):
    # x/o: (N, C, HW) fully VMEM-resident; gamma/beta/eps: (C, 1); stats: (C, 2).
    x = x_ref[...].astype(jnp.float32)
    m = x.shape[0] * x.shape[2]
    inv_m = 1.0 / m
    mean = jnp.sum(jnp.sum(x, axis=2, keepdims=True), axis=0, keepdims=True) * inv_m
    centered = x - mean                                     # two-pass variance
    var = jnp.sum(jnp.sum(centered * centered, axis=2, keepdims=True),
                  axis=0, keepdims=True) * inv_m            # (1, C, 1)
    inv_std = jax.lax.rsqrt(var + eps_ref[...][None])       # (1, C, 1)
    scale = gamma_ref[...][None] * inv_std
    o_ref[...] = (centered * scale + beta_ref[...][None]).astype(o_ref.dtype)
    stats_ref[...] = jnp.concatenate([mean[0], var[0]], axis=-1)   # (C, 2)


def _bn_train_fused(x3, gamma_c, beta_c, eps_c):
    n, c, hw = x3.shape
    out3, stats = pl.pallas_call(
        _bn_fused_kernel,
        out_shape=(jax.ShapeDtypeStruct((n, c, hw), x3.dtype),
                   jax.ShapeDtypeStruct((c, 2), jnp.float32)),
        compiler_params=pltpu.CompilerParams(vmem_limit_bytes=_VMEM_LIMIT),
    )(x3, gamma_c.reshape(c, 1), beta_c.reshape(c, 1), eps_c.reshape(c, 1))
    return out3, stats[:, 0], stats[:, 1]


# --------------------------- streamed two-sweep path --------------------------

def _make_stats_kernel(thw, fold):
    nchunks = thw // fold

    def kernel(x_ref, out_ref, s_acc, s2_acc):
        j = pl.program_id(1)

        @pl.when(j == 0)
        def _init():
            s_acc[...] = jnp.zeros_like(s_acc)
            s2_acc[...] = jnp.zeros_like(s2_acc)

        x = x_ref[...].astype(jnp.float32)                  # (tr, thw)
        s = x[:, 0:fold]
        s2 = s * s
        for k in range(1, nchunks):                         # static unroll (<=8), pure VALU
            chunk = x[:, k * fold:(k + 1) * fold]
            s = s + chunk
            s2 = s2 + chunk * chunk
        s_acc[...] += s
        s2_acc[...] += s2

        @pl.when(j == pl.num_programs(1) - 1)
        def _finalize():
            # One cross-lane (XLU) reduce per row-tile, packed into a single store.
            row_sum = jnp.sum(s_acc[...], axis=-1, keepdims=True)      # (tr, 1)
            row_sumsq = jnp.sum(s2_acc[...], axis=-1, keepdims=True)   # (tr, 1)
            out_ref[...] = jnp.concatenate([row_sum, row_sumsq], axis=-1)

    return kernel


def _bn_norm_kernel(x_ref, scale_ref, shift_ref, o_ref):
    # x/o: (tr, thw); scale/shift: (tr, 1) per-row folded gamma*inv_std / beta-mean*scale.
    o_ref[...] = (x_ref[...] * scale_ref[...] + shift_ref[...]).astype(o_ref.dtype)


def _bn_train_streamed(x3, gamma_c, beta_c, eps_c):
    n, c, hw = x3.shape
    rows = n * c
    m = n * hw
    x2 = x3.reshape(rows, hw)            # free reshape: NCHW is row-major contiguous
    tr, thw = _pick_tiles(rows, hw, _MAX_TILE_BYTES)
    fold = _pick_fold(thw)
    grid = (rows // tr, hw // thw)

    # ---- Sweep 1: per-row [sum, sumsq] (one read of x) --------------------------
    partial = pl.pallas_call(
        _make_stats_kernel(thw, fold),
        out_shape=jax.ShapeDtypeStruct((rows, 2), jnp.float32),
        grid=grid,
        in_specs=[pl.BlockSpec((tr, thw), lambda i, j: (i, j))],
        out_specs=pl.BlockSpec((tr, 2), lambda i, j: (i, 0)),
        scratch_shapes=[pltpu.VMEM((tr, fold), jnp.float32),
                        pltpu.VMEM((tr, fold), jnp.float32)],
        compiler_params=pltpu.CompilerParams(
            dimension_semantics=("parallel", "arbitrary"),
            vmem_limit_bytes=_VMEM_LIMIT),
    )(x2)

    # Finalize stats (O(N*C) work in plain JAX).
    per_chan = partial.reshape(n, c, 2).sum(axis=0)          # (C, 2)
    mean = per_chan[:, 0] / m
    # One-pass variance (f32 accumulation); clamp guards tiny cancellation error.
    # TODO(synk): use compensated / two-pass accumulation here if very large N*H*W
    # with large activation means needs tighter tolerances.
    var = jnp.maximum(per_chan[:, 1] / m - mean * mean, 0.0)
    inv_std = jax.lax.rsqrt(var + eps_c)
    scale = gamma_c * inv_std                                # (C,)
    shift = beta_c - mean * scale
    scale_rows = jnp.tile(scale, (n,)).reshape(rows, 1)      # per-row folded params
    shift_rows = jnp.tile(shift, (n,)).reshape(rows, 1)

    # ---- Sweep 2: normalize (one read + one write of x) -------------------------
    out2 = pl.pallas_call(
        _bn_norm_kernel,
        out_shape=jax.ShapeDtypeStruct((rows, hw), x3.dtype),
        grid=grid,
        in_specs=[pl.BlockSpec((tr, thw), lambda i, j: (i, j)),
                  pl.BlockSpec((tr, 1), lambda i, j: (i, 0)),
                  pl.BlockSpec((tr, 1), lambda i, j: (i, 0))],
        out_specs=pl.BlockSpec((tr, thw), lambda i, j: (i, j)),
        compiler_params=pltpu.CompilerParams(
            dimension_semantics=("parallel", "parallel"),
            vmem_limit_bytes=_VMEM_LIMIT),
    )(x2, scale_rows, shift_rows)
    return out2.reshape(n, c, hw), mean, var


# ----------------------------------- wrapper ----------------------------------

def batchnorm2d_train(x_nchw, gamma, beta, epsilon, momentum,
                      moving_mean, moving_var, *, force_streamed=False):
    """Training-mode forward of MyBatchNormalization2d_CPP.

    Returns (output NCHW, new_moving_mean (1, C), new_moving_var (1, C)).
    """
    n, c, h, w = x_nchw.shape
    hw = h * w
    m = n * hw
    x3 = x_nchw.reshape(n, c, hw)        # free (contiguous) reshape, no transpose
    gamma_c = gamma.reshape(c).astype(jnp.float32)
    beta_c = beta.reshape(c).astype(jnp.float32)
    eps_c = epsilon.reshape(c).astype(jnp.float32)

    x_bytes_f32 = 4 * n * c * hw
    if (not force_streamed) and x_bytes_f32 <= _FUSED_MAX_X_BYTES:
        out3, mean, var = _bn_train_fused(x3, gamma_c, beta_c, eps_c)
    else:
        out3, mean, var = _bn_train_streamed(x3, gamma_c, beta_c, eps_c)

    out_nchw = out3.reshape(n, c, h, w)

    # Running-statistics update (PyTorch nn.BatchNorm2d convention:
    # moving = (1 - momentum) * moving + momentum * batch, unbiased running var).
    # TODO(synk): original MyBatchNorm2D_CPP extension unavailable; assuming the
    # standard PyTorch momentum direction / unbiased running-variance convention.
    mom = momentum.reshape(())
    var_unbiased = var * (m / (m - 1)) if m > 1 else var
    new_moving_mean = (1.0 - mom) * moving_mean + mom * mean.reshape(1, c)
    new_moving_var = (1.0 - mom) * moving_var + mom * var_unbiased.reshape(1, c)
    return out_nchw, new_moving_mean, new_moving_var


if __name__ == "__main__":
    key = jax.random.PRNGKey(0)
    N, C, H, W = 2, 4, 16, 16

    # Deterministic parameter/buffer init matching the module's __init__.
    x = jax.random.normal(key, (N, C, H, W), dtype=jnp.float32)
    gamma = jnp.ones((1, C), jnp.float32)
    beta = jnp.zeros((1, C), jnp.float32)
    epsilon = 1e-5 * jnp.ones((1, C), jnp.float32)
    momentum = 0.1 * jnp.ones((1,), jnp.float32)
    moving_mean = jnp.zeros((1, C), jnp.float32)
    moving_var = jnp.ones((1, C), jnp.float32)

    bn = jax.jit(batchnorm2d_train, static_argnames=("force_streamed",))

    # Pure-JAX reference.
    mean_ref = jnp.mean(x, axis=(0, 2, 3), keepdims=True)
    var_ref = jnp.mean((x - mean_ref) ** 2, axis=(0, 2, 3), keepdims=True)
    ref = (x - mean_ref) / jnp.sqrt(var_ref + 1e-5)
    ref = gamma.reshape(1, C, 1, 1) * ref + beta.reshape(1, C, 1, 1)
    Mtot = N * H * W
    mm_ref = 0.1 * mean_ref.reshape(1, C)
    mv_ref = 0.9 * jnp.ones((1, C)) + 0.1 * var_ref.reshape(1, C) * (Mtot / (Mtot - 1))

    # Exercise both the fused-VMEM fast path and the streamed two-sweep path.
    for streamed in (False, True):
        out, mm, mv = bn(x, gamma, beta, epsilon, momentum,
                         moving_mean, moving_var, force_streamed=streamed)
        jax.block_until_ready((out, mm, mv))
        assert jnp.allclose(out, ref, atol=1e-4, rtol=1e-4)
        assert jnp.allclose(mm, mm_ref, atol=1e-5, rtol=1e-5)
        assert jnp.allclose(mv, mv_ref, atol=1e-5, rtol=1e-5)

    print("KERNEL_OK")
</pallas_src>

<mosaic_0001>
module attributes {stable_mosaic.version = 11 : i64} {
  func.func @_bn_fused_kernel(%arg0: memref<2x4x256xf32, #tpu.memory_space<vmem>>, %arg1: memref<4x1xf32, #tpu.memory_space<vmem>>, %arg2: memref<4x1xf32, #tpu.memory_space<vmem>>, %arg3: memref<4x1xf32, #tpu.memory_space<vmem>>, %arg4: memref<2x4x256xf32, #tpu.memory_space<vmem>>, %arg5: memref<4x2xf32, #tpu.memory_space<vmem>>) attributes {dimension_semantics = [], scalar_prefetch = 0 : i64, scratch_operands = 0 : i64, tpu.core_type = #tpu.core_type<tc>} {
    %c0 = arith.constant 0 : index
    %c0_0 = arith.constant 0 : index
    %c0_1 = arith.constant 0 : index
    %0 = vector.load %arg0[%c0, %c0_0, %c0_1] : memref<2x4x256xf32, #tpu.memory_space<vmem>>, vector<2x4x256xf32>
    %cst = arith.constant dense<0.000000e+00> : vector<2x4xf32>
    %1 = vector.multi_reduction <add>, %0, %cst [2] : vector<2x4x256xf32> to vector<2x4xf32>
    %2 = vector.shape_cast %1 : vector<2x4xf32> to vector<2x4x1xf32>
    %cst_2 = arith.constant dense<0.000000e+00> : vector<4x1xf32>
    %3 = vector.multi_reduction <add>, %2, %cst_2 [0] : vector<2x4x1xf32> to vector<4x1xf32>
    %4 = vector.shape_cast %3 : vector<4x1xf32> to vector<1x4x1xf32>
    %cst_3 = arith.constant 0.001953125 : f32
    %5 = vector.broadcast %cst_3 : f32 to vector<1x4x1xf32>
    %6 = arith.mulf %4, %5 : vector<1x4x1xf32>
    %7 = vector.broadcast %6 : vector<1x4x1xf32> to vector<2x4x256xf32>
    %8 = arith.subf %0, %7 : vector<2x4x256xf32>
    %9 = arith.mulf %8, %8 : vector<2x4x256xf32>
    %cst_4 = arith.constant dense<0.000000e+00> : vector<2x4xf32>
    %10 = vector.multi_reduction <add>, %9, %cst_4 [2] : vector<2x4x256xf32> to vector<2x4xf32>
    %11 = vector.shape_cast %10 : vector<2x4xf32> to vector<2x4x1xf32>
    %cst_5 = arith.constant dense<0.000000e+00> : vector<4x1xf32>
    %12 = vector.multi_reduction <add>, %11, %cst_5 [0] : vector<2x4x1xf32> to vector<4x1xf32>
    %13 = vector.shape_cast %12 : vector<4x1xf32> to vector<1x4x1xf32>
    %cst_6 = arith.constant 0.001953125 : f32
    %14 = vector.broadcast %cst_6 : f32 to vector<1x4x1xf32>
    %15 = arith.mulf %13, %14 : vector<1x4x1xf32>
    %c0_7 = arith.constant 0 : index
    %c0_8 = arith.constant 0 : index
    %16 = vector.load %arg3[%c0_7, %c0_8] : memref<4x1xf32, #tpu.memory_space<vmem>>, vector<4x1xf32>
    %17 = vector.shape_cast %16 : vector<4x1xf32> to vector<1x4x1xf32>
    %18 = arith.addf %15, %17 : vector<1x4x1xf32>
    %19 = math.rsqrt %18 : vector<1x4x1xf32>
    %c0_9 = arith.constant 0 : index
    %c0_10 = arith.constant 0 : index
    %20 = vector.load %arg1[%c0_9, %c0_10] : memref<4x1xf32, #tpu.memory_space<vmem>>, vector<4x1xf32>
    %21 = vector.shape_cast %20 : vector<4x1xf32> to vector<1x4x1xf32>
    %22 = arith.mulf %21, %19 : vector<1x4x1xf32>
    %23 = vector.broadcast %22 : vector<1x4x1xf32> to vector<2x4x256xf32>
    %24 = arith.mulf %8, %23 : vector<2x4x256xf32>
    %c0_11 = arith.constant 0 : index
    %c0_12 = arith.constant 0 : index
    %25 = vector.load %arg2[%c0_11, %c0_12] : memref<4x1xf32, #tpu.memory_space<vmem>>, vector<4x1xf32>
    %26 = vector.shape_cast %25 : vector<4x1xf32> to vector<1x4x1xf32>
    %27 = vector.broadcast %26 : vector<1x4x1xf32> to vector<2x4x256xf32>
    %28 = arith.addf %24, %27 : vector<2x4x256xf32>
    %c0_13 = arith.constant 0 : index
    %c0_14 = arith.constant 0 : index
    %c0_15 = arith.constant 0 : index
    %29 = vector.load %arg4[%c0_13, %c0_14, %c0_15] : memref<2x4x256xf32, #tpu.memory_space<vmem>>, vector<2x4x256xf32>
    tpu.vector_store %arg4[%c0_13, %c0_14, %c0_15], %28 {strides = array<i32>} : memref<2x4x256xf32, #tpu.memory_space<vmem>>, vector<2x4x256xf32>,
    %30 = vector.shape_cast %6 : vector<1x4x1xf32> to vector<4x1xf32>
    %31 = vector.shape_cast %15 : vector<1x4x1xf32> to vector<4x1xf32>
    %32 = tpu.concatenate %30, %31 in 1 : vector<4x1xf32>, vector<4x1xf32> -> vector<4x2xf32>
    %c0_16 = arith.constant 0 : index
    %c0_17 = arith.constant 0 : index
    %33 = vector.load %arg5[%c0_16, %c0_17] : memref<4x2xf32, #tpu.memory_space<vmem>>, vector<4x2xf32>
    tpu.vector_store %arg5[%c0_16, %c0_17], %32 {strides = array<i32>} : memref<4x2xf32, #tpu.memory_space<vmem>>, vector<4x2xf32>,
    return
  }
}

</mosaic_0001>

<bundles_post_ra>
// kernel: batchnorm2d_train.1
= control target key start
LH: loop header
LB: loop body
LE: loop exit
PB: predicated region body
PF: predicated region fallthrough
CT: control target
= control target key end

     0   :  { %vm27_vm0 = vcmask 1043456   ;;  %v131_v10 = vmov 839922192   ;;  %v46_v12 = vlaneseq  ;;  %v132_v35 = vmov 0   ;;  %s199_s0 = inlined_call_operand.vmem [shape: f32[2,4,256], index: 0, kind: input, shape index: {}]   ;;  %s200_s2 = inlined_call_operand.vmem [shape: f32[4,1], index: 2, kind: input, shape index: {}]   ;;  %s201_s3 = inlined_call_operand.vmem [shape: f32[4,1], index: 3, kind: input, shape index: {}]   ;;  %s202_s5 = inlined_call_operand.vmem [shape: f32[4,2], index: 5, kind: output, shape index: {1}]   ;;  %s203_s1 = inlined_call_operand.vmem [shape: f32[4,1], index: 1, kind: input, shape index: {}]   ;;  %s204_s4 = inlined_call_operand.vmem [shape: f32[2,4,256], index: 4, kind: output, shape index: {0}]  }
   0x1   :  { %v19_v0 = vld [vmem:[%s199_s0] sm:$0xff]  ;;  %v20_v1 = vld [vmem:[%s199_s0 + $0x8] sm:$0xff]  ;;  %v44_v11 = vunpack.c.l.s4 %v131_v10  ;;  %125 = vset.pattern.permute.xlu0 %v132_v35  ;;  %126 = vset.pattern.permute.xlu1 %v132_v35  ;;  %vm111_vm1 = vcmask 7168   ;;  %vm113_vm2 = vcmask 11264  }
   0x2   :  { %v23_v2 = vcombine.high %v19_v0, %v19_v0  ;;  %v28_v3 = vsel %vm27_vm0, %v19_v0, 0.0  ;;  %v24_v4 = vcombine.high %v20_v1, %v20_v1  ;;  %v33_v6 = vsel %vm27_vm0, %v20_v1, 0.0  ;;  %v94_v36 = vld [vmem:[%s200_s2] sm:$0xf] }
   0x3   :  { %v45_v14 = vunpack.c.0.s8 %v44_v11  ;;  %v47_v15 = vshrl.u32 %v46_v12, 7  ;;  %v75_v42 = vld [vmem:[%s201_s3] sm:$0xf] }
   0x4   :  { %v29_v5 = vsel %vm27_vm0, %v23_v2, 0.0  ;;  %v34_v7 = vsel %vm27_vm0, %v24_v4, 0.0  ;;  %v78_v46 = vld [vmem:[%s203_s1] sm:$0xf] }
   0x5   :  { %v30_v8 = vadd.f32 %v29_v5, %v28_v3  ;;  %v35_v9 = vadd.f32 %v34_v7, %v33_v6  ;;  %v48_v19 = vsub.s32 %v45_v14, %v47_v15 }
   0x7   :  { %31 = vadd.xlane.f32.xlu0 %v30_v8 }
   0xb   :  { %36 = vadd.xlane.f32.xlu0 %v35_v9 }
  0x94   :  { %v32_v13 = vpop.xlane.xlu0 %31 }
  0x95   :  { %v38_v17 = vsel %vm27_vm0, %v32_v13, 0.0 }
  0x98   :  { %v37_v16 = vpop.xlane.xlu0 %36 }
  0x99   :  { %v39_v18 = vsel %vm27_vm0, %v37_v16, 0.0 }
  0x9a   :  { %v40_v20 = vadd.f32 %v39_v18, %v38_v17 }
  0x9c   :  { %v41_v21 = vmul.f32 0.001953125, %v40_v20 }
  0x9e   :  { %v49_v22 = vrot.slane %v41_v21, %v48_v19 }
  0xa0   :  { %v52_v23 = vsub.f32 %v20_v1, %v49_v22  ;;  %v51_v24 = vsub.f32 %v19_v0, %v49_v22 }
  0xa2   :  { %v53_v25 = vmul.f32 %v51_v24, %v51_v24  ;;  %v54_v26 = vmul.f32 %v52_v23, %v52_v23 }
  0xa4   :  { %v57_v27 = vcombine.high %v53_v25, %v53_v25  ;;  %v58_v28 = vcombine.high %v54_v26, %v54_v26  ;;  %v61_v29 = vsel %vm27_vm0, %v53_v25, 0.0  ;;  %v66_v33 = vsel %vm27_vm0, %v54_v26, 0.0 }
  0xa6   :  { %v62_v30 = vsel %vm27_vm0, %v57_v27, 0.0  ;;  %v67_v32 = vsel %vm27_vm0, %v58_v28, 0.0 }
  0xa7   :  { %v63_v31 = vadd.f32 %v62_v30, %v61_v29  ;;  %v68_v34 = vadd.f32 %v67_v32, %v66_v33 }
  0xa9   :  { %64 = vadd.xlane.f32.xlu1 %v63_v31 }
  0xad   :  { %69 = vadd.xlane.f32.xlu1 %v68_v34 }
  0xbe   :  { %97 = vperm.xlu1 %126, %v94_v36  }
 0x136   :  { %v65_v37 = vpop.xlane.xlu1 %64 }
 0x137   :  { %v71_v39 = vsel %vm27_vm0, %v65_v37, 0.0 }
 0x13a   :  { %v70_v38 = vpop.xlane.xlu1 %69 }
 0x13b   :  { %v72_v40 = vsel %vm27_vm0, %v70_v38, 0.0 }
 0x13c   :  { %v73_v41 = vadd.f32 %v72_v40, %v71_v39 }
 0x13e   :  { %v74_v43 = vmul.f32 0.001953125, %v73_v41  ;;  %v98_v49 = vpop.permute.xlu1 %97 }
 0x13f   :  { %v105_v52 = vrot.slane %v98_v49, %v48_v19 }
 0x140   :  { %v76_v44 = vadd.f32 %v75_v42, %v74_v43  ;;  %v112_v45 = vsel %vm111_vm1, %v41_v21, %v74_v43 }
 0x141   :  { %114 = vst.msk [vmem:[%s202_s5] sm:$0xf] %vm113_vm2, %v112_v45 }
 0x142   :  { %129 = vrsqrt.f32 %v76_v44 }
 0x14c   :  { %v130_v47 = vpop.eup %129 }
 0x14d   :  { %v79_v48 = vmul.f32 %v130_v47, %v78_v46 }
 0x14f   :  { %82 = vperm.xlu0 %125, %v79_v48  }
 0x1ce   :  { %v83_v50 = vpop.permute.xlu0 %82 }
 0x1cf   :  { %v90_v51 = vrot.slane %v83_v50, %v48_v19 }
 0x1d1   :  { %v92_v53 = vmul.f32 %v90_v51, %v51_v24  ;;  %v93_v54 = vmul.f32 %v90_v51, %v52_v23 }
 0x1d3   :  { %v107_v55 = vadd.f32 %v105_v52, %v92_v53  ;;  %v108_v56 = vadd.f32 %v105_v52, %v93_v54 }
 0x1d5   :  { %109 = vst [vmem:[%s204_s4] sm:$0xff] %v107_v55  ;;  %110 = vst [vmem:[%s204_s4 + $0x8] sm:$0xff] %v108_v56 }

</bundles_post_ra>
